<compile_context>
chip_gen: v7x
topology: tpu7x:2x2x1
jax: 0.10.0
libtpu: 0.0.40
codegen_flags: <defaults>
</compile_context>

<pallas_src>
import functools

import jax
import jax.numpy as jnp
from jax import lax
from jax.experimental import pallas as pl
from jax.experimental.pallas import tpu as pltpu


def _mhsa_kernel(q_ref, k_ref, v_ref, w_ref, b_ref, o_ref,
                 m_ref, l_ref, acc_ref, oacc_ref, qs_ref,
                 *, scale, prob_dtype):
    """One (batch, q-tile, head) triple; kv tiles stream along the last axis.

    Refs:
      q_ref   : (1, 1, tq, Dp)  lane-dense per-head query tile (compute dtype)
      k_ref   : (1, 1, tk, Dp)  lane-dense per-head key tile
      v_ref   : (1, 1, tk, Dp)  lane-dense per-head value tile
      w_ref   : (1, Dp, Ep)     fc_out^T rows for this head, zero-padded
      b_ref   : (1, Ep)         fc_out bias (f32), zero-padded
      o_ref   : (1, tq, Ep)     lane-dense output tile (padding sliced outside)
      m_ref   : (tq, 1)  f32    running row max for the current head
      l_ref   : (tq, 1)  f32    running softmax denominator
      acc_ref : (tq, Dp) f32    unnormalized per-head context
      oacc_ref: (tq, Ep) f32    fc_out accumulator across heads
      qs_ref  : (tq, Dp)        pre-scaled q (compute dtype), filled at kv == 0
    """
    h = pl.program_id(2)
    kv = pl.program_id(3)
    last_h = pl.num_programs(2) - 1
    last_kv = pl.num_programs(3) - 1

    @pl.when(kv == 0)
    def _init_head():
        m_ref[...] = jnp.full(m_ref.shape, -jnp.inf, dtype=jnp.float32)
        l_ref[...] = jnp.zeros(l_ref.shape, dtype=jnp.float32)
        acc_ref[...] = jnp.zeros(acc_ref.shape, dtype=jnp.float32)
        # q is resident across the kv axis: scale it ONCE per (n, q-tile, head),
        # not every kv step.
        qs_ref[...] = (q_ref[0, 0].astype(jnp.float32) * scale).astype(qs_ref.dtype)

    @pl.when((h == 0) & (kv == 0))
    def _init_out():
        oacc_ref[...] = jnp.zeros(oacc_ref.shape, dtype=jnp.float32)

    k = k_ref[0, 0]                      # (tk, Dp), compute dtype
    v = v_ref[0, 0]                      # (tk, Dp), compute dtype

    # QK^T on the MXU: (tq, Dp) x (tk, Dp) contracted over Dp -> (tq, tk) f32.
    s = lax.dot_general(qs_ref[...], k, (((1,), (1,)), ((), ())),
                        preferred_element_type=jnp.float32)

    m_prev = m_ref[...]                                           # (tq, 1) f32
    m_new = jnp.maximum(m_prev, jnp.max(s, axis=-1, keepdims=True))
    alpha = jnp.exp(m_prev - m_new)                               # (tq, 1) f32
    # exp in prob_dtype (bf16 EUP path on v6e/v7x, f32 on v5e); denom in f32.
    p = jnp.exp((s - m_new).astype(prob_dtype))                   # (tq, tk)
    l_ref[...] = alpha * l_ref[...] + jnp.sum(
        p.astype(jnp.float32), axis=-1, keepdims=True)
    m_ref[...] = m_new

    # PV on the MXU; probabilities in v's (compute) dtype, f32 accumulation.
    ctx = jnp.dot(p.astype(v.dtype), v, preferred_element_type=jnp.float32)
    acc_ref[...] = alpha * acc_ref[...] + ctx                     # full-width

    @pl.when(kv == last_kv)
    def _finalize_head():
        # Deferred softmax normalization; exact reciprocal (f32-grade output).
        inv_l = pl.reciprocal(l_ref[...], approx=False)           # (tq, 1) f32
        ctx_h = (acc_ref[...] * inv_l).astype(w_ref.dtype)        # (tq, Dp)
        # fc_out decomposed over heads: out += ctx_h @ W^T[h*D:(h+1)*D, :].
        oacc_ref[...] += jnp.dot(ctx_h, w_ref[0],
                                 preferred_element_type=jnp.float32)

    @pl.when((kv == last_kv) & (h == last_h))
    def _writeback():
        o_ref[0] = (oacc_ref[...] + b_ref[...]).astype(o_ref.dtype)


def _itemsize(dt):
    return jnp.zeros((), dt).dtype.itemsize


def _sublane_multiple(*dtypes):
    """Minimum second-minor tile multiple for these dtypes (8 f32 / 16 bf16)."""
    m = 8
    for dt in dtypes:
        m = max(m, 8 * (4 // max(1, _itemsize(dt))))
    return m


def _pick_tile(dim, pref, multiple, prefer_lane=False):
    """Tile for `dim`: the full dim if dim <= pref (full blocks are exempt from
    the (sublane,128) rule); otherwise the largest divisor <= pref that is a
    multiple of `multiple`, preferring 128-aligned divisors when prefer_lane.
    Falls back to the full dim."""
    if dim <= pref:
        return dim
    best = None
    best_lane = None
    for t in range(pref, multiple - 1, -1):
        if dim % t == 0 and t % multiple == 0:
            if best is None:
                best = t
            if t % 128 == 0:
                best_lane = t
                break
    if prefer_lane and best_lane is not None:
        return best_lane
    return best if best is not None else dim


def _vmem_capacity_bytes():
    try:
        cap = int(pltpu.get_tpu_info().vmem_capacity_bytes)
        if cap > 0:
            return cap
    except Exception:
        pass
    return 64 * 1024 * 1024   # conservative: v7x per-TensorCore VMEM


def _default_prob_dtype(compute_dtype):
    """bf16 exp only on parts with a bf16 EUP path (v6e / v7x); f32 elsewhere."""
    try:
        kind = jax.devices()[0].device_kind.lower()
    except Exception:
        kind = ""
    if ("v6" in kind) or ("v7" in kind) or ("tpu7" in kind):
        return compute_dtype
    return jnp.float32


def mhsa_forward(values, keys, query, fc_w, fc_b, *, heads,
                 q_tile=None, kv_tile=None,
                 compute_dtype=jnp.bfloat16, prob_dtype=None):
    """values/keys/query: (N, L, E); fc_w: (E, E); fc_b: (E,). Returns (N, Lq, E)."""
    N, vlen, E = values.shape
    klen = keys.shape[1]
    qlen = query.shape[1]
    assert vlen == klen, "value_len must equal key_len"
    H = heads
    D = E // H
    assert D * H == E, "embed_size must be divisible by heads"

    out_dtype = query.dtype

    # ---- generation-aware knobs -------------------------------------------
    vmem_cap = _vmem_capacity_bytes()
    small_vmem = vmem_cap < 100 * 1024 * 1024        # v7x-class (64 MiB / TC)
    if q_tile is None:
        q_tile = 256
    if kv_tile is None:
        kv_tile = 256 if small_vmem else 1024        # bigger kv tiles on v5e/v6e
    if prob_dtype is None:
        prob_dtype = _default_prob_dtype(compute_dtype)
    vmem_limit = int(min(vmem_cap * 3 // 4, 96 * 1024 * 1024))

    sub = _sublane_multiple(compute_dtype, out_dtype)
    tq = _pick_tile(qlen, q_tile, sub)
    tk = _pick_tile(klen, kv_tile, sub, prefer_lane=True)
    # v7x has 2 TensorCores fed via the parallel axes: keep >= 2 parallel units.
    if N * (qlen // tq) < 2:
        tq = _pick_tile(qlen, max(sub, qlen // 2), sub)
    assert qlen % tq == 0 and klen % tk == 0

    # Lane-dense padded widths (unmasked full-width vector ops / stores).
    Dp = max(128, ((D + 127) // 128) * 128)
    Ep = max(128, ((E + 127) // 128) * 128)

    # Head-major, lane-padded layouts + bf16 cast (host-side layout plumbing).
    def _to_head_major(x, L):
        x = x.reshape(N, L, H, D).transpose(0, 2, 1, 3).astype(compute_dtype)
        if Dp != D:
            x = jnp.pad(x, ((0, 0), (0, 0), (0, 0), (0, Dp - D)))
        return x                                      # (N, H, L, Dp)

    q_hm = _to_head_major(query, qlen)
    k_hm = _to_head_major(keys, klen)
    v_hm = _to_head_major(values, vlen)

    # fc_out weight pre-transposed and split per head: out = sum_h ctx_h @ W_h.
    w_heads = fc_w.T.reshape(H, D, E).astype(compute_dtype)
    w_p = jnp.zeros((H, Dp, Ep), dtype=compute_dtype).at[:, :D, :E].set(w_heads)
    b_p = jnp.zeros((1, Ep), dtype=jnp.float32).at[:, :E].set(
        fc_b.astype(jnp.float32)[None, :])

    # NOTE: scale = 1/sqrt(embed_size), matching the PyTorch reference exactly.
    scale = 1.0 / (E ** 0.5)

    kernel = functools.partial(_mhsa_kernel, scale=scale, prob_dtype=prob_dtype)

    grid = (N, qlen // tq, H, klen // tk)

    out_p = pl.pallas_call(
        kernel,
        out_shape=jax.ShapeDtypeStruct((N, qlen, Ep), out_dtype),
        grid_spec=pltpu.PrefetchScalarGridSpec(
            num_scalar_prefetch=0,
            grid=grid,
            in_specs=[
                pl.BlockSpec((1, 1, tq, Dp), lambda n, qi, h, ki: (n, h, qi, 0)),  # q
                pl.BlockSpec((1, 1, tk, Dp), lambda n, qi, h, ki: (n, h, ki, 0)),  # k
                pl.BlockSpec((1, 1, tk, Dp), lambda n, qi, h, ki: (n, h, ki, 0)),  # v
                # Per-head weight slab (small) — double-buffering it along the
                # head axis is cheap and overlaps the per-head weight DMA.
                pl.BlockSpec((1, Dp, Ep), lambda n, qi, h, ki: (h, 0, 0)),         # W_h
                pl.BlockSpec((1, Ep), lambda n, qi, h, ki: (0, 0)),                # bias
            ],
            out_specs=pl.BlockSpec((1, tq, Ep), lambda n, qi, h, ki: (n, qi, 0)),
            scratch_shapes=[
                pltpu.VMEM((tq, 1), jnp.float32),      # running max (one head live)
                pltpu.VMEM((tq, 1), jnp.float32),      # running denom
                pltpu.VMEM((tq, Dp), jnp.float32),     # per-head unnormalized ctx
                pltpu.VMEM((tq, Ep), jnp.float32),     # fc_out accumulator
                pltpu.VMEM((tq, Dp), compute_dtype),   # pre-scaled q
            ],
        ),
        compiler_params=pltpu.CompilerParams(
            dimension_semantics=("parallel", "parallel", "arbitrary", "arbitrary"),
            vmem_limit_bytes=vmem_limit,
        ),
    )(q_hm, k_hm, v_hm, w_p, b_p)

    return out_p[:, :, :E]


def mhsa_reference(values, keys, query, fc_w, fc_b, *, heads):
    """Pure-JAX reference mirroring the PyTorch forward exactly."""
    N, vlen, E = values.shape
    klen, qlen = keys.shape[1], query.shape[1]
    H, D = heads, E // heads
    v = values.reshape(N, vlen, H, D)
    k = keys.reshape(N, klen, H, D)
    q = query.reshape(N, qlen, H, D)
    attn = jnp.einsum("nqhd,nkhd->nhqk", q, k)
    attn = jax.nn.softmax(attn / (E ** 0.5), axis=-1)
    out = jnp.einsum("nhql,nlhd->nqhd", attn, v).reshape(N, qlen, E)
    return out @ fc_w.T + fc_b


if __name__ == "__main__":
    # small shapes consistent with the module
    N, seq, embed_size, heads = 2, 8, 32, 4

    key = jax.random.PRNGKey(0)
    kv_, kk, kq, kw, kb = jax.random.split(key, 5)
    values = jax.random.normal(kv_, (N, seq, embed_size), dtype=jnp.float32)
    keys_in = jax.random.normal(kk, (N, seq, embed_size), dtype=jnp.float32)
    query = jax.random.normal(kq, (N, seq, embed_size), dtype=jnp.float32)

    # fc_out parameters (the per-head values/keys/queries Linears are unused in
    # the reference forward, so they are intentionally omitted).
    bound = 1.0 / (embed_size ** 0.5)
    fc_w = jax.random.uniform(kw, (embed_size, embed_size),
                              minval=-bound, maxval=bound, dtype=jnp.float32)
    fc_b = jax.random.uniform(kb, (embed_size,),
                              minval=-bound, maxval=bound, dtype=jnp.float32)

    ref = mhsa_reference(values, keys_in, query, fc_w, fc_b, heads=heads)

    # Strict f32 path: validates the flash / online-softmax + fused-fc math.
    out_f32 = mhsa_forward(values, keys_in, query, fc_w, fc_b, heads=heads,
                           compute_dtype=jnp.float32, prob_dtype=jnp.float32)
    out_f32 = jax.block_until_ready(out_f32)
    assert out_f32.shape == (N, seq, embed_size)
    assert jnp.allclose(out_f32, ref, atol=1e-4, rtol=1e-4), \
        "f32 path mismatch vs JAX reference"

    # Default fast path: bf16 MXU operands / bf16 exp (stats + accums in f32).
    out = mhsa_forward(values, keys_in, query, fc_w, fc_b, heads=heads)
    out = jax.block_until_ready(out)
    assert out.shape == (N, seq, embed_size)
    # Tolerance reflects bf16 MXU/EUP compute (f32 stats and accumulators).
    assert jnp.allclose(out, ref, atol=3e-2, rtol=3e-2), \
        "bf16 path mismatch vs JAX reference"

    print("KERNEL_OK")
</pallas_src>

<mosaic_0001>
module attributes {stable_mosaic.version = 11 : i64} {
  func.func @_mhsa_kernel(%arg0: i32, %arg1: i32, %arg2: i32, %arg3: i32, %arg4: memref<1x1x8x128xf32, #tpu.memory_space<vmem>>, %arg5: memref<1x1x8x128xf32, #tpu.memory_space<vmem>>, %arg6: memref<1x1x8x128xf32, #tpu.memory_space<vmem>>, %arg7: memref<1x128x128xf32, #tpu.memory_space<vmem>>, %arg8: memref<1x128xf32, #tpu.memory_space<vmem>>, %arg9: memref<1x8x128xf32, #tpu.memory_space<vmem>>, %arg10: memref<8x1xf32, #tpu.memory_space<vmem>>, %arg11: memref<8x1xf32, #tpu.memory_space<vmem>>, %arg12: memref<8x128xf32, #tpu.memory_space<vmem>>, %arg13: memref<8x128xf32, #tpu.memory_space<vmem>>, %arg14: memref<8x128xf32, #tpu.memory_space<vmem>>) attributes {dimension_semantics = [#tpu.dimension_semantics<parallel>, #tpu.dimension_semantics<parallel>, #tpu.dimension_semantics<arbitrary>, #tpu.dimension_semantics<arbitrary>], iteration_bounds = array<i64: 2, 1, 4, 1>, scalar_prefetch = 0 : i64, scratch_operands = 5 : i64, tpu.core_type = #tpu.core_type<tc>, window_params = [{transform_indices = @transform_0, window_bounds = array<i64: 1, 1, 8, 128>}, {transform_indices = @transform_1, window_bounds = array<i64: 1, 1, 8, 128>}, {transform_indices = @transform_2, window_bounds = array<i64: 1, 1, 8, 128>}, {transform_indices = @transform_3, window_bounds = array<i64: 1, 128, 128>}, {pipeline_mode = #tpu.pipeline_mode<synchronous>, transform_indices = @transform_4, window_bounds = array<i64: 1, 128>}, {transform_indices = @transform_5, window_bounds = array<i64: 1, 8, 128>}]} {
    %c0_i32 = arith.constant 0 : i32
    %0 = arith.cmpi eq, %arg3, %c0_i32 : i32
    %1 = arith.extui %0 : i1 to i32
    %c0_i32_0 = arith.constant 0 : i32
    %2 = arith.cmpi ne, %1, %c0_i32_0 : i32
    scf.if %2 {
      %cst_32 = arith.constant 0xFF800000 : f32
      %44 = vector.broadcast %cst_32 : f32 to vector<8x1xf32>
      %c0_33 = arith.constant 0 : index
      %c0_34 = arith.constant 0 : index
      %45 = vector.load %arg10[%c0_33, %c0_34] : memref<8x1xf32, #tpu.memory_space<vmem>>, vector<8x1xf32>
      tpu.vector_store %arg10[%c0_33, %c0_34], %44 {strides = array<i32>} : memref<8x1xf32, #tpu.memory_space<vmem>>, vector<8x1xf32>,
      %cst_35 = arith.constant 0.000000e+00 : f32
      %46 = vector.broadcast %cst_35 : f32 to vector<8x1xf32>
      %c0_36 = arith.constant 0 : index
      %c0_37 = arith.constant 0 : index
      %47 = vector.load %arg11[%c0_36, %c0_37] : memref<8x1xf32, #tpu.memory_space<vmem>>, vector<8x1xf32>
      tpu.vector_store %arg11[%c0_36, %c0_37], %46 {strides = array<i32>} : memref<8x1xf32, #tpu.memory_space<vmem>>, vector<8x1xf32>,
      %cst_38 = arith.constant 0.000000e+00 : f32
      %48 = vector.broadcast %cst_38 : f32 to vector<8x128xf32>
      %c0_39 = arith.constant 0 : index
      %c0_40 = arith.constant 0 : index
      %49 = vector.load %arg12[%c0_39, %c0_40] : memref<8x128xf32, #tpu.memory_space<vmem>>, vector<8x128xf32>
      tpu.vector_store %arg12[%c0_39, %c0_40], %48 {strides = array<i32>} : memref<8x128xf32, #tpu.memory_space<vmem>>, vector<8x128xf32>,
      %c0_41 = arith.constant 0 : index
      %c0_42 = arith.constant 0 : index
      %c0_43 = arith.constant 0 : index
      %c0_44 = arith.constant 0 : index
      %50 = vector.load %arg4[%c0_41, %c0_42, %c0_43, %c0_44] : memref<1x1x8x128xf32, #tpu.memory_space<vmem>>, vector<1x1x8x128xf32>
      %51 = vector.shape_cast %50 : vector<1x1x8x128xf32> to vector<8x128xf32>
      %cst_45 = arith.constant 0.176776692 : f32
      %52 = vector.broadcast %cst_45 : f32 to vector<8x128xf32>
      %53 = arith.mulf %51, %52 : vector<8x128xf32>
      %c0_46 = arith.constant 0 : index
      %c0_47 = arith.constant 0 : index
      %54 = vector.load %arg14[%c0_46, %c0_47] : memref<8x128xf32, #tpu.memory_space<vmem>>, vector<8x128xf32>
      tpu.vector_store %arg14[%c0_46, %c0_47], %53 {strides = array<i32>} : memref<8x128xf32, #tpu.memory_space<vmem>>, vector<8x128xf32>,
    } else {
    }
    %c0_i32_1 = arith.constant 0 : i32
    %3 = arith.cmpi eq, %arg2, %c0_i32_1 : i32
    %c0_i32_2 = arith.constant 0 : i32
    %4 = arith.cmpi eq, %arg3, %c0_i32_2 : i32
    %5 = arith.andi %3, %4 : i1
    %6 = arith.extui %5 : i1 to i32
    %c0_i32_3 = arith.constant 0 : i32
    %7 = arith.cmpi ne, %6, %c0_i32_3 : i32
    scf.if %7 {
      %cst_32 = arith.constant 0.000000e+00 : f32
      %44 = vector.broadcast %cst_32 : f32 to vector<8x128xf32>
      %c0_33 = arith.constant 0 : index
      %c0_34 = arith.constant 0 : index
      %45 = vector.load %arg13[%c0_33, %c0_34] : memref<8x128xf32, #tpu.memory_space<vmem>>, vector<8x128xf32>
      tpu.vector_store %arg13[%c0_33, %c0_34], %44 {strides = array<i32>} : memref<8x128xf32, #tpu.memory_space<vmem>>, vector<8x128xf32>,
    } else {
    }
    %c0 = arith.constant 0 : index
    %c0_4 = arith.constant 0 : index
    %c0_5 = arith.constant 0 : index
    %c0_6 = arith.constant 0 : index
    %8 = vector.load %arg5[%c0, %c0_4, %c0_5, %c0_6] : memref<1x1x8x128xf32, #tpu.memory_space<vmem>>, vector<1x1x8x128xf32>
    %9 = vector.shape_cast %8 : vector<1x1x8x128xf32> to vector<8x128xf32>
    %c0_7 = arith.constant 0 : index
    %c0_8 = arith.constant 0 : index
    %c0_9 = arith.constant 0 : index
    %c0_10 = arith.constant 0 : index
    %10 = vector.load %arg6[%c0_7, %c0_8, %c0_9, %c0_10] : memref<1x1x8x128xf32, #tpu.memory_space<vmem>>, vector<1x1x8x128xf32>
    %11 = vector.shape_cast %10 : vector<1x1x8x128xf32> to vector<8x128xf32>
    %c0_11 = arith.constant 0 : index
    %c0_12 = arith.constant 0 : index
    %12 = vector.load %arg14[%c0_11, %c0_12] : memref<8x128xf32, #tpu.memory_space<vmem>>, vector<8x128xf32>
    %cst = arith.constant dense<0.000000e+00> : vector<8x8xf32>
    %13 = tpu.matmul %12, %9, %cst {dimension_numbers = #tpu.dot_dimension_numbers<[1], [1], [0], [0], [0, 0, 1, 0], [], []>} : vector<8x128xf32>, vector<8x128xf32>, vector<8x8xf32> -> vector<8x8xf32>
    %c0_13 = arith.constant 0 : index
    %c0_14 = arith.constant 0 : index
    %14 = vector.load %arg10[%c0_13, %c0_14] : memref<8x1xf32, #tpu.memory_space<vmem>>, vector<8x1xf32>
    %cst_15 = arith.constant dense<0xFF800000> : vector<8xf32>
    %15 = vector.multi_reduction <maximumf>, %13, %cst_15 [1] : vector<8x8xf32> to vector<8xf32>
    %16 = vector.shape_cast %15 : vector<8xf32> to vector<8x1xf32>
    %17 = arith.maximumf %14, %16 : vector<8x1xf32>
    %18 = arith.subf %14, %17 : vector<8x1xf32>
    %19 = math.exp %18 : vector<8x1xf32>
    %20 = vector.broadcast %17 : vector<8x1xf32> to vector<8x8xf32>
    %21 = arith.subf %13, %20 : vector<8x8xf32>
    %22 = math.exp %21 : vector<8x8xf32>
    %c0_16 = arith.constant 0 : index
    %c0_17 = arith.constant 0 : index
    %23 = vector.load %arg11[%c0_16, %c0_17] : memref<8x1xf32, #tpu.memory_space<vmem>>, vector<8x1xf32>
    %24 = arith.mulf %19, %23 : vector<8x1xf32>
    %cst_18 = arith.constant dense<0.000000e+00> : vector<8xf32>
    %25 = vector.multi_reduction <add>, %22, %cst_18 [1] : vector<8x8xf32> to vector<8xf32>
    %26 = vector.shape_cast %25 : vector<8xf32> to vector<8x1xf32>
    %27 = arith.addf %24, %26 : vector<8x1xf32>
    %c0_19 = arith.constant 0 : index
    %c0_20 = arith.constant 0 : index
    %28 = vector.load %arg11[%c0_19, %c0_20] : memref<8x1xf32, #tpu.memory_space<vmem>>, vector<8x1xf32>
    tpu.vector_store %arg11[%c0_19, %c0_20], %27 {strides = array<i32>} : memref<8x1xf32, #tpu.memory_space<vmem>>, vector<8x1xf32>,
    %c0_21 = arith.constant 0 : index
    %c0_22 = arith.constant 0 : index
    %29 = vector.load %arg10[%c0_21, %c0_22] : memref<8x1xf32, #tpu.memory_space<vmem>>, vector<8x1xf32>
    tpu.vector_store %arg10[%c0_21, %c0_22], %17 {strides = array<i32>} : memref<8x1xf32, #tpu.memory_space<vmem>>, vector<8x1xf32>,
    %cst_23 = arith.constant dense<0.000000e+00> : vector<8x128xf32>
    %30 = tpu.matmul %22, %11, %cst_23 {dimension_numbers = #tpu.dot_dimension_numbers<[1], [0], [0], [1], [0, 0, 1, 1], [], []>} : vector<8x8xf32>, vector<8x128xf32>, vector<8x128xf32> -> vector<8x128xf32>
    %c0_24 = arith.constant 0 : index
    %c0_25 = arith.constant 0 : index
    %31 = vector.load %arg12[%c0_24, %c0_25] : memref<8x128xf32, #tpu.memory_space<vmem>>, vector<8x128xf32>
    %32 = vector.broadcast %19 : vector<8x1xf32> to vector<8x128xf32>
    %33 = arith.mulf %32, %31 : vector<8x128xf32>
    %34 = arith.addf %33, %30 : vector<8x128xf32>
    %c0_26 = arith.constant 0 : index
    %c0_27 = arith.constant 0 : index
    %35 = vector.load %arg12[%c0_26, %c0_27] : memref<8x128xf32, #tpu.memory_space<vmem>>, vector<8x128xf32>
    tpu.vector_store %arg12[%c0_26, %c0_27], %34 {strides = array<i32>} : memref<8x128xf32, #tpu.memory_space<vmem>>, vector<8x128xf32>,
    %c0_i32_28 = arith.constant 0 : i32
    %36 = arith.cmpi eq, %arg3, %c0_i32_28 : i32
    %37 = arith.extui %36 : i1 to i32
    %c0_i32_29 = arith.constant 0 : i32
    %38 = arith.cmpi ne, %37, %c0_i32_29 : i32
    scf.if %38 {
      %c0_32 = arith.constant 0 : index
      %c0_33 = arith.constant 0 : index
      %44 = vector.load %arg11[%c0_32, %c0_33] : memref<8x1xf32, #tpu.memory_space<vmem>>, vector<8x1xf32>
      %45 = tpu.reciprocal %44 : vector<8x1xf32> -> vector<8x1xf32>
      %c0_34 = arith.constant 0 : index
      %c0_35 = arith.constant 0 : index
      %46 = vector.load %arg12[%c0_34, %c0_35] : memref<8x128xf32, #tpu.memory_space<vmem>>, vector<8x128xf32>
      %47 = vector.broadcast %45 : vector<8x1xf32> to vector<8x128xf32>
      %48 = arith.mulf %46, %47 : vector<8x128xf32>
      %c0_36 = arith.constant 0 : index
      %c0_37 = arith.constant 0 : index
      %49 = vector.load %arg13[%c0_36, %c0_37] : memref<8x128xf32, #tpu.memory_space<vmem>>, vector<8x128xf32>
      %c0_38 = arith.constant 0 : index
      %c0_39 = arith.constant 0 : index
      %c0_40 = arith.constant 0 : index
      %50 = vector.load %arg7[%c0_38, %c0_39, %c0_40] : memref<1x128x128xf32, #tpu.memory_space<vmem>>, vector<1x128x128xf32>
      %51 = vector.shape_cast %50 : vector<1x128x128xf32> to vector<128x128xf32>
      %cst_41 = arith.constant dense<0.000000e+00> : vector<8x128xf32>
      %52 = tpu.matmul %48, %51, %cst_41 {dimension_numbers = #tpu.dot_dimension_numbers<[1], [0], [0], [1], [0, 0, 1, 1], [], []>} : vector<8x128xf32>, vector<128x128xf32>, vector<8x128xf32> -> vector<8x128xf32>
      %53 = arith.addf %49, %52 : vector<8x128xf32>
      %c0_42 = arith.constant 0 : index
      %c0_43 = arith.constant 0 : index
      %54 = vector.load %arg13[%c0_42, %c0_43] : memref<8x128xf32, #tpu.memory_space<vmem>>, vector<8x128xf32>
      tpu.vector_store %arg13[%c0_42, %c0_43], %53 {strides = array<i32>} : memref<8x128xf32, #tpu.memory_space<vmem>>, vector<8x128xf32>,
    } else {
    }
    %c0_i32_30 = arith.constant 0 : i32
    %39 = arith.cmpi eq, %arg3, %c0_i32_30 : i32
    %c3_i32 = arith.constant 3 : i32
    %40 = arith.cmpi eq, %arg2, %c3_i32 : i32
    %41 = arith.andi %39, %40 : i1
    %42 = arith.extui %41 : i1 to i32
    %c0_i32_31 = arith.constant 0 : i32
    %43 = arith.cmpi ne, %42, %c0_i32_31 : i32
    scf.if %43 {
      %c0_32 = arith.constant 0 : index
      %c0_33 = arith.constant 0 : index
      %44 = vector.load %arg13[%c0_32, %c0_33] : memref<8x128xf32, #tpu.memory_space<vmem>>, vector<8x128xf32>
      %c0_34 = arith.constant 0 : index
      %c0_35 = arith.constant 0 : index
      %45 = vector.load %arg8[%c0_34, %c0_35] : memref<1x128xf32, #tpu.memory_space<vmem>>, vector<1x128xf32>
      %46 = vector.broadcast %45 : vector<1x128xf32> to vector<8x128xf32>
      %47 = arith.addf %44, %46 : vector<8x128xf32>
      %c0_36 = arith.constant 0 : index
      %c0_37 = arith.constant 0 : index
      %c0_38 = arith.constant 0 : index
      %48 = vector.load %arg9[%c0_36, %c0_37, %c0_38] : memref<1x8x128xf32, #tpu.memory_space<vmem>>, vector<1x8x128xf32>
      %49 = vector.shape_cast %48 : vector<1x8x128xf32> to vector<8x128xf32>
      %50 = vector.shape_cast %47 : vector<8x128xf32> to vector<1x8x128xf32>
      tpu.vector_store %arg9[%c0_36, %c0_37, %c0_38], %50 {strides = array<i32>} : memref<1x8x128xf32, #tpu.memory_space<vmem>>, vector<1x8x128xf32>,
    } else {
    }
    return
  }
  func.func @transform_0(%arg0: i32, %arg1: i32, %arg2: i32, %arg3: i32) -> (i32, i32, i32, i32) {
    %c0_i32 = arith.constant 0 : i32
    %c0_i32_0 = arith.constant 0 : i32
    return %arg0, %arg2, %arg1, %c0_i32 : i32, i32, i32, i32
  }
  func.func @transform_1(%arg0: i32, %arg1: i32, %arg2: i32, %arg3: i32) -> (i32, i32, i32, i32) {
    %c0_i32 = arith.constant 0 : i32
    %c0_i32_0 = arith.constant 0 : i32
    return %arg0, %arg2, %arg3, %c0_i32 : i32, i32, i32, i32
  }
  func.func @transform_2(%arg0: i32, %arg1: i32, %arg2: i32, %arg3: i32) -> (i32, i32, i32, i32) {
    %c0_i32 = arith.constant 0 : i32
    %c0_i32_0 = arith.constant 0 : i32
    return %arg0, %arg2, %arg3, %c0_i32 : i32, i32, i32, i32
  }
  func.func @transform_3(%arg0: i32, %arg1: i32, %arg2: i32, %arg3: i32) -> (i32, i32, i32) {
    %c0_i32 = arith.constant 0 : i32
    %c0_i32_0 = arith.constant 0 : i32
    %c0_i32_1 = arith.constant 0 : i32
    return %arg2, %c0_i32, %c0_i32_0 : i32, i32, i32
  }
  func.func @transform_4(%arg0: i32, %arg1: i32, %arg2: i32, %arg3: i32) -> (i32, i32) {
    %c0_i32 = arith.constant 0 : i32
    %c0_i32_0 = arith.constant 0 : i32
    %c0_i32_1 = arith.constant 0 : i32
    return %c0_i32, %c0_i32_0 : i32, i32
  }
  func.func @transform_5(%arg0: i32, %arg1: i32, %arg2: i32, %arg3: i32) -> (i32, i32, i32) {
    %c0_i32 = arith.constant 0 : i32
    %c0_i32_0 = arith.constant 0 : i32
    return %arg0, %arg1, %c0_i32 : i32, i32, i32
  }
}

</mosaic_0001>

<bundles_post_ra>
// kernel: tpu_custom_call.1
= control target key start
LH: loop header
LB: loop body
LE: loop exit
PB: predicated region body
PF: predicated region fallthrough
CT: control target
= control target key end

     0   :  { %s1943_s0 = inlined_call_operand.hbm [shape: f32[2,4,8,128], index: 0, kind: input, shape index: {}]   ;;  %s1944_s1 = inlined_call_operand.hbm [shape: f32[2,4,8,128], index: 1, kind: input, shape index: {}]   ;;  %s1945_s2 = inlined_call_operand.hbm [shape: f32[2,4,8,128], index: 2, kind: input, shape index: {}]   ;;  %s1946_s3 = inlined_call_operand.hbm [shape: f32[4,128,128], index: 3, kind: input, shape index: {}]   ;;  %s1947_s4 = inlined_call_operand.vmem [shape: f32[1,128], index: 4, kind: input, shape index: {}]   ;;  %s1948_s5 = inlined_call_operand.hbm [shape: f32[2,8,128], index: 5, kind: output, shape index: {}]  }
   0x1   :  { %1968 = sst [smem:[#allocation34_spill]] %s1944_s1 }
   0x2   :  { %1969 = sst [smem:[#allocation35_spill]] %s1947_s4 }
   0x3   :  { %1970 = sst [smem:[#allocation36_spill]] %s1948_s5 }
   0x4   :  { %10 = vsyncpa [#allocation8], 0 }
   0x5   :  { %12 = vsyncpa [#allocation8 + $0x1], 0 }
   0x6   :  { %13 = vsyncpa [#allocation11], 0 }
   0x7   :  { %15 = vsyncpa [#allocation11 + $0x1], 0 }
   0x8   :  { %16 = vsyncpa [#allocation14], 0 }
   0x9   :  { %18 = vsyncpa [#allocation14 + $0x1], 0 }
   0xa   :  { %19 = vsyncpa [#allocation9], 0 }
   0xb   :  { %21 = vsyncpa [#allocation9 + $0x1], 0  ;;  %s1491_s18 = smov 0   ;;  %s1493_s19 = smov 0  }
   0xc   :  { %s1495_s20 = smov 0   ;;  %s1497_s21 = smov 0  }
   0xd   :  { %s1499_s22 = smov 0   ;;  %s1501_s23 = smov 0  }
   0xe   :  { %s1503_s24 = smov 0   ;;  %s1505_s25 = smov 0  }
   0xf   :  { %s1507_s26 = smov 0   ;;  %s1509_s27 = smov 0  }
  0x10   :  { %s1511_s28 = smov 0   ;;  %s1513_s29 = smov 0  }
  0x11   :  { %s1515_s30 = smov 0   ;;  %s1517_s6 = smov 0  }
  0x12 LB: > { %1971 = sst [smem:[#allocation20_spill]] %s1394_s18  ;;  %s1560_s7 = sadd.s32 4294967295, %s1446_s6   ;;  %s1446_s6 = sphi %s1517_s6, %s27_s6   ;;  %s1442_s30 = sphi %s1515_s30, %s2025_s30   ;;  %s1438_s29 = sphi %s1513_s29, %s2033_s29   ;;  %s1434_s28 = sphi %s1511_s28, %s2023_s28   ;;  %s1430_s27 = sphi %s1509_s27, %s2032_s27   ;;  %s1426_s26 = sphi %s1507_s26, %s2031_s26   ;;  %s1422_s25 = sphi %s1505_s25, %s2030_s25   ;;  %s1418_s24 = sphi %s1503_s24, %s2029_s24   ;;  %s1414_s23 = sphi %s1501_s23, %s2028_s23   ;;  %s1410_s22 = sphi %s1499_s22, %s2027_s22   ;;  %s1406_s21 = sphi %s1497_s21, %s2026_s21   ;;  %s1402_s20 = sphi %s1495_s20, %s2020_s20   ;;  %s1398_s19 = sphi %s1493_s19, %s2019_s19   ;;  %s1394_s18 = sphi %s1491_s18, %s2018_s18  }
  0x13   : > { %1972 = sst [smem:[#allocation21_spill]] %s1398_s19  ;;  %s45_s9 = sadd.s32 1, %s1438_s29 }
  0x14   : > { %1973 = sst [smem:[#allocation22_spill]] %s1402_s20  ;;  %s53_s10 = sadd.s32 1, %s1442_s30 }
  0x15   : > { %1974 = sst [smem:[#allocation23_spill]] %s1430_s27  ;;  %p47_p0 = scmp.ge.s32.totalorder %s45_s9, 4 }
  0x16   : > { %1975 = sst [smem:[#allocation24_spill]] %s1434_s28  ;;  %s64_s11 = sadd.s32 1, %s1426_s26 }
  0x17   : > { %1976 = sst [smem:[#allocation25_spill]] %s1442_s30  ;;  %p71_p1 = scmp.ne.s32.totalorder %s1426_s26, %s1422_s25 }
  0x18   : > { %1977 = sst [smem:[#allocation26_spill]] %s1446_s6  ;;  %p72_p2 = scmp.eq.s32.totalorder %s1446_s6, 0 }
  0x19   : > { %s2035_s9 = smov (%p47_p0, %s45_s9), 0  ;;  %s2037_s10 = smov (!%p47_p0, %s53_s10), %s1442_s30 }
  0x1a   : > { %1978 = sst [smem:[#allocation27_spill]] %s2035_s9  ;;  %s58_s12 = ssub.s32 %s1438_s29, %s2035_s9 }
  0x1b   : > { %p1576_p3 = por %p72_p2, %p71_p1  ;;  %p55_p4 = scmp.ge.s32.totalorder %s2037_s10, 2 }
  0x1c   : > { %p77_p5 = scmp.ne.s32.totalorder %s1422_s25, %s1418_s24  ;;  %p78_p6 = scmp.eq.s32.totalorder %s1560_s7, 0 }
  0x1d   : > { %p148_p7 = scmp.eq.s32.totalorder %s58_s12, 0  ;;  %s2039_s10 = smov (%p55_p4, %s2037_s10), 0 }
  0x1e   : > { %1980 = sst [smem:[#allocation28_spill]] %s2039_s10  ;;  %p1586_p8 = por %p78_p6, %p77_p5 }
  0x1f   : > { %s150_s15 = sadd.s32 1, %s1414_s23  ;;  %s57_s16 = ssub.s32 %s1442_s30, %s2039_s10 }
  0x20   : > { %s1981_s14 = scalar_select %p1586_p8, 1, 0 }
  0x21   : > { %p157_p9 = scmp.ne.s32.totalorder %s1414_s23, %s1410_s22  ;;  %s59_s17 = sor.u32 %s58_s12, %s57_s16 }
  0x22   : > { %p163_p10 = scmp.ne.s32.totalorder %s1410_s22, %s1406_s21  ;;  %p62_p11 = scmp.eq.s32.totalorder %s59_s17, 0 }
  0x23   : > { %p1599_p12 = por %p157_p9, %p72_p2  ;;  %p197_p0 = scmp.eq.s32.totalorder %s57_s16, 0 }
  0x24   : > { %s1604_s8 = scalar_select %p148_p7, %s1414_s23, %s150_s15  }
  0x25   : > { %s1607_s9 = scalar_select %p62_p11, %s1426_s26, %s64_s11  }
  0x26   : > { %1983 = sst [smem:[#allocation29_spill]] %s1604_s8  ;;  %p1611_p13 = por %p163_p10, %p78_p6 }
  0x27   : > { %1984 = sst [smem:[#allocation30_spill]] %s1607_s9  ;;  %s199_s21 = sadd.s32 1, %s1402_s20 }
  0x28   : > { %s1985_s10 = scalar_select %p1611_p13, 1, 0 }
  0x29   : > { %p209_p1 = scmp.ne.s32.totalorder %s1402_s20, %s1398_s19  ;;  %p210_p2 = scmp.eq.s32.totalorder %s1560_s7, 7 }
  0x2a   : > { %s1619_s12 = scalar_select %p197_p0, %s1402_s20, %s199_s21  }
  0x2b   : > { %p215_p4 = scmp.ne.s32.totalorder %s1398_s19, %s1394_s18  ;;  %s1987_s15 = sadd.s32 4294967294, %s1446_s6  }
  0x2c   : > { %1986 = sst [smem:[#allocation31_spill]] %s1619_s12  ;;  %p216_p5 = scmp.eq.s32.totalorder %s1987_s15, 7 }
  0x2d   : > { %p1626_p7 = por %p210_p2, %p209_p1  ;;  %p1042_p6 = scmp.lt.s32.totalorder %s1446_s6, 8 }
  0x2e   : > { %p1631_p9 = por %p216_p5, %p215_p4  ;;  %s1955_s16 = sand.u32 1, %s1426_s26  }
  0x2f   : > { %s1988_s11 = scalar_select %p1626_p7, 1, 0 }
  0x30   : > { %s1990_s17 = scalar_select %p1631_p9, 1, 0 }
  0x31   : > { %1989 = sst [smem:[#allocation32_spill]] %s1988_s11  ;;  %s1638_s9 = sshll.u32 %s1955_s16, 3 }
  0x32   : > { %1991 = sst [smem:[#allocation33_spill]] %s1990_s17  ;;  %s897_s21 = sshll.u32 %s1442_s30, 2 }
  0x33   : > { %s249_s8 = sadd.s32 %s1438_s29, %s897_s21  ;;  %p1644_p10 = pnand %p1042_p6, %p1576_p3 }
  0x34   : > { %s1648_s12 = sshll.u32 %s249_s8, 7  ;;  %s260_s20 = sand.u32 1, %s1446_s6  }
  0x35   : > { %s1992_s15 = scalar_select %p1644_p10, 1, 0 }
  0x36   : > { %s1993_s1 = sld [smem:[#allocation34_spill]]  ;;  %s264_s21 = scalar_lea.vmem [#allocation10], %s1638_s9 }
  0x37   : > { %s274_s13 = sshll.u32 %s264_s21, 4  ;;  %p1660_p3 = pnand %p1042_p6, %p1599_p12  ;;  %s1664_s13 = int_to_ptr.vmem [resolvable:$true] %s274_s13 }
  0x38   : > { %s1667_s8 = scalar_lea.sflag [#allocation11], %s260_s20  ;;  %p1673_p1 = pneg %p1644_p10 }
  0x39   : > { %s1994_s16 = scalar_select %p1660_p3, 1, 0 }
  0x3c   : > { %s1655_s17 = scalar_lea.hbm %s1993_s1, %s1648_s12  ;;  %s1177_s21 = scalar_lea.hbm %s1993_s1, 1024 }
  0x3d   : > { %s1172_s30 = scalar_lea.hbm %s1655_s17, 128  ;;  %p1178_p12 = scmp.lt.u32.totalorder %s1655_s17, %s1993_s1 }
  0x3e   : > { %p1173_p0 = scmp.ne.s32.totalorder %s1655_s17, %s1172_s30  ;;  %p1179_p5 = scmp.lt.u32.totalorder %s1177_s21, %s1172_s30 }
  0x3f   : > { %p1181_p11 = scmp.lt.u32.totalorder %s1172_s30, %s1655_s17 }
  0x40   : > { %p1175_p2 = pnand %p1673_p1, %p1173_p0  ;;  %p1180_p6 = por %p1179_p5, %p1178_p12 }
  0x42   : > { %p1176_p4 = pneg %p1175_p2  ;;  %p1182_p9 = por %p1181_p11, %p1180_p6 }
  0x44   : > { %p1183_p7 = pnand %p1182_p9, %p1176_p4 }
  0x46   : > { %1186 = shalt.err (!%p1183_p7)
}
  0x47   : > { %s1187_s20 = scalar_lea.vmem %s1664_s13, 128  ;;  %s1448_s18 = smov [#allocation10]  }
  0x48   : > { %p1188_p0 = scmp.ne.s32.totalorder %s1664_s13, %s1187_s20  ;;  %s1192_s24 = sshll.u32 %s1448_s18, 4  ;;  %s1193_s24 = int_to_ptr.vmem [resolvable:$false] %s1192_s24 }
  0x49   : > { %s1194_s28 = scalar_lea.vmem %s1193_s24, 256  ;;  %p1195_p8 = scmp.lt.s32.totalorder %s1664_s13, %s1193_s24 }
  0x4a   : > { %p1190_p2 = pnand %p1188_p0, %p1673_p1  ;;  %p1196_p3 = scmp.lt.s32.totalorder %s1194_s28, %s1187_s20 }
  0x4c   : > { %p1191_p13 = pneg %p1190_p2  ;;  %p1197_p12 = por %p1196_p3, %p1195_p8 }
  0x4e   : > { %p1198_p5 = pnand %p1197_p12, %p1191_p13 }
  0x50   : > { %1201 = shalt.err (!%p1198_p5)
}
  0x51   : > { %1031 = dma.hbm_to_vmem [thread:$0]  (!%p1644_p10), %s1655_s17, 128, %s1664_s13, %s1667_s8  }
  0x52   : > { %p321_p7 = scmp.lt.s32.totalorder %s1446_s6, 9  ;;  %p1996_p9 = scmp.ge.s32.totalorder %s1446_s6, 1 }
  0x53   : > { %s1708_s20 = scalar_lea.hbm %s1943_s0, %s1648_s12  ;;  %s243_s18 = scalar_lea.vmem [#allocation7], %s1638_s9 }
  0x54   : > { %p1700_p11 = pnand %p1996_p9, %p321_p7  ;;  %s253_s24 = sshll.u32 %s243_s18, 4  ;;  %s1711_s24 = int_to_ptr.vmem [resolvable:$true] %s253_s24 }
  0x55   : > { %s1717_s28 = scalar_lea.hbm %s1945_s2, %s1648_s12  ;;  %s1998_s1 = sand.u32 1, %s1426_s26  }
  0x56   : > { %s1997_s30 = scalar_select %p1700_p11, 1, 0 }
  0x57   : > { %s240_s6 = scalar_lea.sflag [#allocation8], %s1998_s1  ;;  %s1202_s4 = scalar_lea.hbm %s1708_s20, 128 }
  0x58   : > { %p1203_p8 = scmp.ne.s32.totalorder %s1708_s20, %s1202_s4  ;;  %s1207_s27 = scalar_lea.hbm %s1943_s0, 1024 }
  0x59   : > { %p1208_p4 = scmp.lt.u32.totalorder %s1708_s20, %s1943_s0  ;;  %p1209_p6 = scmp.lt.u32.totalorder %s1207_s27, %s1202_s4 }
  0x5a   : > { %p1205_p13 = pnand %p1203_p8, %p1673_p1  ;;  %p1211_p2 = scmp.lt.u32.totalorder %s1202_s4, %s1708_s20 }
  0x5b   : > { %p1210_p0 = por %p1209_p6, %p1208_p4 }
  0x5c   : > { %p1206_p3 = pneg %p1205_p13 }
  0x5d   : > { %p1212_p12 = por %p1211_p2, %p1210_p0 }
  0x5f   : > { %p1213_p5 = pnand %p1212_p12, %p1206_p3 }
  0x61   : > { %1216 = shalt.err (!%p1213_p5)
}
  0x62   : > { %s1217_s1 = scalar_lea.vmem %s1711_s24, 128  ;;  %s1449_s12 = smov [#allocation7]  }
  0x63   : > { %p1218_p7 = scmp.ne.s32.totalorder %s1711_s24, %s1217_s1  ;;  %s1222_s17 = sshll.u32 %s1449_s12, 4  ;;  %s1223_s17 = int_to_ptr.vmem [resolvable:$false] %s1222_s17 }
  0x64   : > { %s1224_s19 = scalar_lea.vmem %s1223_s17, 256  ;;  %p1225_p13 = scmp.lt.s32.totalorder %s1711_s24, %s1223_s17 }
  0x65   : > { %p1220_p9 = pnand %p1218_p7, %p1673_p1  ;;  %p1226_p11 = scmp.lt.s32.totalorder %s1224_s19, %s1217_s1 }
  0x67   : > { %p1221_p8 = pneg %p1220_p9  ;;  %p1227_p4 = por %p1226_p11, %p1225_p13 }
  0x69   : > { %p1228_p6 = pnand %p1227_p4, %p1221_p8 }
  0x6b   : > { %1231 = shalt.err (!%p1228_p6)
}
  0x6c   : > { %1028 = dma.hbm_to_vmem [thread:$0]  (!%p1644_p10), %s1708_s20, 128, %s1711_s24, %s240_s6  }
  0x6d   : > { %s285_s4 = scalar_lea.vmem [#allocation12], %s1638_s9  ;;  %s302_s13 = sand.u32 1, %s1414_s23  }
  0x6e   : > { %s295_s27 = sshll.u32 %s285_s4, 4  ;;  %s1232_s11 = scalar_lea.hbm %s1717_s28, 128  ;;  %s296_s27 = int_to_ptr.vmem [resolvable:$true] %s295_s27 }
  0x6f   : > { %p1233_p11 = scmp.ne.s32.totalorder %s1717_s28, %s1232_s11  ;;  %s1237_s1 = scalar_lea.hbm %s1945_s2, 1024 }
  0x70   : > { %p1238_p2 = scmp.lt.u32.totalorder %s1717_s28, %s1945_s2  ;;  %p1239_p12 = scmp.lt.u32.totalorder %s1237_s1, %s1232_s11 }
  0x71   : > { %p1235_p3 = pnand %p1233_p11, %p1673_p1  ;;  %p1241_p7 = scmp.lt.u32.totalorder %s1232_s11, %s1717_s28 }
  0x72   : > { %p1240_p5 = por %p1239_p12, %p1238_p2 }
  0x73   : > { %p1236_p0 = pneg %p1235_p3 }
  0x74   : > { %p1242_p9 = por %p1241_p7, %p1240_p5 }
  0x76   : > { %p1243_p8 = pnand %p1242_p9, %p1236_p0 }
  0x78   : > { %1246 = shalt.err (!%p1243_p8)
}
  0x79   : > { %s1247_s6 = scalar_lea.vmem %s296_s27, 128  ;;  %s1450_s9 = smov [#allocation12]  }
  0x7a   : > { %p1248_p13 = scmp.ne.s32.totalorder %s296_s27, %s1247_s6  ;;  %s1252_s20 = sshll.u32 %s1450_s9, 4  ;;  %s1253_s20 = int_to_ptr.vmem [resolvable:$false] %s1252_s20 }
  0x7b   : > { %s1254_s24 = scalar_lea.vmem %s1253_s20, 256  ;;  %p1255_p11 = scmp.lt.s32.totalorder %s296_s27, %s1253_s20 }
  0x7c   : > { %p1250_p4 = pnand %p1248_p13, %p1673_p1  ;;  %p1256_p3 = scmp.lt.s32.totalorder %s1254_s24, %s1247_s6 }
  0x7e   : > { %p1251_p6 = pneg %p1250_p4  ;;  %p1257_p10 = por %p1256_p3, %p1255_p11 }
  0x80   : > { %p1258_p2 = pnand %p1257_p10, %p1251_p6 }
  0x82   : > { %1261 = shalt.err (!%p1258_p2)
}
  0x83   : > { %p1999_p12 = scmp.ne.s32.totalorder %s1992_s15, 0  ;;  %s905_s5 = sshll.u32 %s302_s13, 7 }
  0x84   : > { %s922_s19 = sshll.u32 %s1438_s29, 11  ;;  %s306_s15 = scalar_lea.vmem [#allocation13], %s905_s5 }
  0x85   : > { %1034 = dma.hbm_to_vmem [thread:$0]  (!%p1999_p12), %s1717_s28, 128, %s296_s27, %s1667_s8  }
  0x86   : > { %s1768_s21 = scalar_lea.hbm %s1946_s3, %s922_s19  ;;  %s313_s18 = sshll.u32 %s306_s15, 4  ;;  %s1770_s18 = int_to_ptr.vmem [resolvable:$true] %s313_s18 }
  0x87   : > { %s1774_s1 = scalar_lea.sflag [#allocation14], %s302_s13  ;;  %s1262_s8 = scalar_lea.hbm %s1768_s21, 2048 }
  0x88   : > { %p1263_p10 = scmp.ne.s32.totalorder %s1768_s21, %s1262_s8  ;;  %p2000_p1 = scmp.ne.s32.totalorder %s1994_s16, 0 }
  0x89   : > { %s1267_s12 = scalar_lea.hbm %s1946_s3, 8192  ;;  %p1268_p9 = scmp.lt.u32.totalorder %s1768_s21, %s1946_s3 }
  0x8a   : > { %p1264_p0 = pneg %p2000_p1  ;;  %p1269_p8 = scmp.lt.u32.totalorder %s1267_s12, %s1262_s8 }
  0x8b   : > { %p1271_p4 = scmp.lt.u32.totalorder %s1262_s8, %s1768_s21 }
  0x8c   : > { %p1265_p5 = pnand %p1264_p0, %p1263_p10  ;;  %p1270_p13 = por %p1269_p8, %p1268_p9 }
  0x8e   : > { %p1266_p7 = pneg %p1265_p5  ;;  %p1272_p6 = por %p1271_p4, %p1270_p13 }
  0x90   : > { %p1273_p11 = pnand %p1272_p6, %p1266_p7 }
  0x92   : > { %1276 = shalt.err (!%p1273_p11)
}
  0x93   : > { %s1277_s13 = scalar_lea.vmem %s1770_s18, 2048  ;;  %s1451_s9 = smov [#allocation13]  }
  0x94   : > { %p1278_p3 = scmp.ne.s32.totalorder %s1770_s18, %s1277_s13  ;;  %s1282_s20 = sshll.u32 %s1451_s9, 4  ;;  %s1283_s20 = int_to_ptr.vmem [resolvable:$false] %s1282_s20 }
  0x95   : > { %s1284_s24 = scalar_lea.vmem %s1283_s20, 4096  ;;  %p1285_p10 = scmp.lt.s32.totalorder %s1770_s18, %s1283_s20 }
  0x96   : > { %p1280_p2 = pnand %p1278_p3, %p1264_p0  ;;  %p1286_p5 = scmp.lt.s32.totalorder %s1284_s24, %s1277_s13 }
  0x98   : > { %p1281_p12 = pneg %p1280_p2  ;;  %p1287_p9 = por %p1286_p5, %p1285_p10 }
  0x9a   : > { %p1288_p8 = pnand %p1287_p9, %p1281_p12 }
  0x9c   : > { %1291 = shalt.err (!%p1288_p8)
}
  0x9d   : > { %s1452_s5 = smov 128   ;;  %s1453_s19 = smov 8  }
  0x9e   : > { %1037 = dma.hbm_to_vmem [thread:$0]  (!%p2000_p1), %s1768_s21, 2048, %s1770_s18, %s1774_s1, %s1452_s5, %s1452_s5, %s1453_s19  }
  0x9f   : > { %p2001_p0 = scmp.ne.s32.totalorder %s1997_s30, 0 }
  0xa0   : > { %s327_s4 = sand.u32 (!%p2001_p0), 1, %s1422_s25   ;;  %p2002_p7 = scmp.ne.s32.totalorder (!%p2001_p0), %s1981_s14, 0 }
  0xa1   : > { %325 = sbr.rel (%p2001_p0) target bundleno = 1242 (0x4da), region = 40  ;;  %s1805_s11 = sshll.u32 (!%p2001_p0), %s327_s4, 3 }
  0xa2   : > { %s328_s15 = scalar_lea.sflag (!%p2001_p0), [#allocation8], %s327_s4  ;;  %s331_s8 = scalar_lea.vmem (!%p2001_p0), [#allocation7], %s1805_s11 }
  0xa8   : > { %1377 = dma.done.wait (%p2002_p7), %s328_s15, 128  }
  0xa9   : > { %1379 = vsyncadd (%p2002_p7), %s328_s15, 4294967168  ;;  %s336_s16 = sand.u32 1, %s1560_s7   ;;  %s340_s30 = scalar_lea.vmem [#allocation10], %s1805_s11 }
  0xaa   : > { %s337_s21 = scalar_lea.sflag [#allocation11], %s336_s16 }
  0xab   : > { %1381 = dma.done.wait (%p2002_p7), %s337_s21, 256  }
  0xac   : > { %1383 = vsyncadd (%p2002_p7), %s337_s21, 4294967040  ;;  %s354_s18 = sand.u32 1, %s1410_s22   ;;  %s349_s28 = scalar_lea.vmem [#allocation12], %s1805_s11 }
  0xad   : > { %s912_s1 = sshll.u32 %s354_s18, 7  ;;  %s355_s27 = scalar_lea.sflag [#allocation14], %s354_s18 }
  0xae   : > { %s1820_s12 = scalar_lea.vmem [#allocation13], %s912_s1  ;;  %p2003_p1 = scmp.ne.s32.totalorder %s1985_s10, 0 }
  0xb0   : > { %1385 = dma.done.wait (%p2003_p1), %s355_s27, 2048  }
  0xb1   : > { %1387 = vsyncadd (%p2003_p1), %s355_s27, 4294965248  ;;  %s2004_s7 = sld [smem:[#allocation21_spill]]  ;;  %s2005_s17 = sld [smem:[#allocation23_spill]]  ;;  %vm404_vm0 = vcmask 7168   ;;  %v1454_v0 = vmov -inf   ;;  %v1455_v1 = vmov 0.0  }
  0xb2   : > { %405 = vst.msk [vmem:[#allocation2] sm:$0xff] %vm404_vm0, %v1454_v0  ;;  %406 = vst.msk [vmem:[#allocation3] sm:$0xff] %vm404_vm0, %v1455_v1  ;;  %v408_v2 = vld [vmem:[%s331_s8] sm:$0xff] }
  0xb3   : > { %407 = vst [vmem:[#allocation4] sm:$0xff] %v1455_v1  ;;  %v409_v3 = vmul.f32 0.17677669, %v408_v2 }
  0xb5   : > { %410 = vst [vmem:[#allocation6] sm:$0xff] %v409_v3 }
  0xb7   : > { %s397_s6 = sand.u32 1, %s2004_s7   ;;  %p411_p13 = scmp.eq.s32.totalorder %s2005_s17, 0 }
  0xb8   : > { %s1830_s14 = sshll.u32 %s397_s6, 3  ;;  %v1456_v4 = vmov (%p411_p13), 0.0  }
  0xb9   : > { %s399_s10 = scalar_lea.vmem [#allocation15], %s1830_s14  ;;  %415 = sbr.rel (!%p411_p13) target bundleno = 192 (0xc0), region = 64  ;;  %416 = vst [vmem:[#allocation5] sm:$0xff] (%p411_p13), %v1456_v4 }
  0xc0 PF: > { %946 = vmatprep.subr.mxu0 %v1455_v1  ;;  %v417_v5 = vld [vmem:[%s340_s30] sm:$0xff]  ;;  %vm1457_vm1 = vmmov 0   ;;  %vm491_vm2 = vcmask 64512   ;;  %v1458_v10 = vmov 0   ;;  %v418_v15 = vld [vmem:[%s349_s28] sm:$0xff]  ;;  %v1459_v26 = vmov 0.0|0.0  }
  0xc1   : > { %947 = vmatpush3.xpose.msra.mxu0 %v417_v5  ;;  %948 = vmatprep.mubr.msk.f32.mxu0 %vm1457_vm1, %v1455_v1  ;;  %v419_v6 = vld [vmem:[#allocation6] sm:$0xff]  ;;  %v611_v23 = vld [vmem:[%s1820_s12] sm:$0xff]  ;;  %v613_v25 = vld [vmem:[%s1820_s12 + $0x10] sm:$0xff]  ;;  %s2006_s13 = sld [smem:[#allocation23_spill]] }
  0xc2   : > { %951 = vmatprep.subr.mxu0 %v1455_v1  ;;  %988 = vmatprep.mubr.msk.f32.mxu1 %vm1457_vm1, %v1455_v1  ;;  %v490_v11 = vld [vmem:[#allocation2] sm:$0xff]  ;;  %v614_v28 = vld [vmem:[%s1820_s12 + $0x18] sm:$0xff]  ;;  %v615_v30 = vld [vmem:[%s1820_s12 + $0x20] sm:$0xff] }
  0xc3   : > { %1164 = vset.pattern.permute.xlu0 %v1458_v10  ;;  %1165 = vset.pattern.permute.xlu1 %v1458_v10  ;;  %v612_v24 = vld [vmem:[%s1820_s12 + $0x8] sm:$0xff]  ;;  %v995_v29 = vpack.c.bf16 %v614_v28, %v613_v25  ;;  %v617_v33 = vld [vmem:[%s1820_s12 + $0x30] sm:$0xff]  ;;  %v618_v34 = vld [vmem:[%s1820_s12 + $0x38] sm:$0xff] }
  0xc4   : > { %949 = vmatmul.mubr.f32.vlgmr.msra.gmra.mrb[0].mxu0 %v419_v6  ;;  %991 = vmatprep.subr.bf16.mxu1 %v1459_v26  ;;  %v992_v27 = vpack.c.bf16 %v612_v24, %v611_v23  ;;  %v616_v31 = vld [vmem:[%s1820_s12 + $0x28] sm:$0xff]  ;;  %v1001_v35 = vpack.c.bf16 %v618_v34, %v617_v33  ;;  %v619_v36 = vld [vmem:[%s1820_s12 + $0x40] sm:$0xff]  ;;  %v621_v39 = vld [vmem:[%s1820_s12 + $0x50] sm:$0xff] }
  0xc5   : > { %953 = vmatprep.mubr.msk.f32.mxu0 %vm1457_vm1, %v1455_v1  ;;  %952 = vmatpush3.msra.mxu0 %v418_v15  ;;  %v998_v32 = vpack.c.bf16 %v616_v31, %v615_v30  ;;  %v620_v37 = vld [vmem:[%s1820_s12 + $0x48] sm:$0xff]  ;;  %v622_v40 = vld [vmem:[%s1820_s12 + $0x58] sm:$0xff]  ;;  %v623_v42 = vld [vmem:[%s1820_s12 + $0x60] sm:$0xff] }
  0xc6   : > { %993 = vmatpush3.bf16.msra.mxu1 %v992_v27  ;;  %v1004_v38 = vpack.c.bf16 %v620_v37, %v619_v36  ;;  %v1007_v41 = vpack.c.bf16 %v622_v40, %v621_v39  ;;  %v624_v43 = vld [vmem:[%s1820_s12 + $0x68] sm:$0xff]  ;;  %v625_v45 = vld [vmem:[%s1820_s12 + $0x70] sm:$0xff]  ;;  %v626_v46 = vld [vmem:[%s1820_s12 + $0x78] sm:$0xff] }
  0xc7   : > { %994 = vmatprep.subr.bf16.mxu1 %v1459_v26  ;;  %v1010_v44 = vpack.c.bf16 %v624_v43, %v623_v42  ;;  %v1013_v47 = vpack.c.bf16 %v626_v46, %v625_v45  ;;  %v507_v48 = vld [vmem:[#allocation3] sm:$0xff]  ;;  %v589_v54 = vld [vmem:[#allocation4] sm:$0xff]  ;;  %p699_p4 = scmp.eq.s32.totalorder %s2006_s13, 3  ;;  %v610_v62 = vld [vmem:[#allocation5] sm:$0xff] }
  0xc8   : > { %s2007_s24 = sld [smem:[#allocation35_spill]] (%p699_p4) }
  0xca   : > { %996 = vmatpush3.bf16.msra.mxu1 %v995_v29 }
  0xcb   : > { %997 = vmatprep.subr.bf16.mxu1 %v1459_v26 }
  0xce   : > { %999 = vmatpush3.bf16.msra.mxu1 %v998_v32  ;;  %v917_v3 = vld [vmem:[%s2007_s24] ss:$0 sm:$0xff] (%p699_p4) }
  0xcf   : > { %1000 = vmatprep.subr.bf16.mxu1 %v1459_v26 }
  0xd2   : > { %1002 = vmatpush3.bf16.msra.mxu1 %v1001_v35 }
  0xd3   : > { %1003 = vmatprep.subr.bf16.mxu1 %v1459_v26 }
  0xd6   : > { %1005 = vmatpush3.bf16.msra.mxu1 %v1004_v38 }
  0xd7   : > { %1006 = vmatprep.subr.bf16.mxu1 %v1459_v26 }
  0xda   : > { %1008 = vmatpush3.bf16.msra.mxu1 %v1007_v41 }
  0xdb   : > { %1009 = vmatprep.subr.bf16.mxu1 %v1459_v26 }
  0xde   : > { %1011 = vmatpush3.bf16.msra.mxu1 %v1010_v44 }
  0xdf   : > { %1012 = vmatprep.subr.bf16.mxu1 %v1459_v26 }
  0xe2   : > { %1014 = vmatpush3.bf16.msra.mxu1 %v1013_v47 }
 0x197   : > { %v486_v7 = vpop.f32.mrb[0].mxu0 }
 0x198   : > { %v950_v8 = vpop.f32.mrb[1].mxu0  ;;  %v492_v9 = vsel %vm491_vm2, %v486_v7, -inf }
 0x199   : > { %493 = vmax.xlane.f32.xlu0 %v492_v9 }
 0x226   : > { %v494_v12 = vpop.xlane.xlu0 %493 }
 0x227   : > { %v495_v13 = vmax.f32 %v490_v11, %v494_v12 }
 0x229   : > { %v496_v14 = vsub.f32 %v490_v11, %v495_v13  ;;  %515 = vst.msk [vmem:[#allocation2] sm:$0xff] %vm404_vm0, %v495_v13  ;;  %501 = vperm.xlu0 %1164, %v495_v13  }
 0x22b   : > { %v497_v21 = vmul.f32 1.442695, %v496_v14 }
 0x2a8   : > { %v502_v16 = vpop.permute.xlu0 %501 }
 0x2a9   : > { %v504_v17 = vsub.f32 %v486_v7, %v502_v16 }
 0x2ab   : > { %v505_v18 = vmul.f32 1.442695, %v504_v17 }
 0x2ad   : > { %1166 = vpow2.f32 %v505_v18 }
 0x2ae   : > { %1168 = vpow2.f32 %v497_v21 }
 0x2b7   : > { %v1167_v19 = vpop.eup %1166 }
 0x2b8   : > { %954 = vmatmul.mubr.msk.f32.vlgmr.msra.gmra.mrb[2].mxu0 %vm491_vm2, %v1167_v19  ;;  %v509_v20 = vsel %vm491_vm2, %v1167_v19, 0.0  ;;  %v1169_v22 = vpop.eup %1168 }
 0x2b9   : > { %510 = vadd.xlane.f32.xlu1 %v509_v20  ;;  %v508_v49 = vmul.f32 %v1169_v22, %v507_v48 }
 0x2ca   : > { %592 = vperm.xlu1 %1165, %v1169_v22  }
 0x346   : > { %v511_v50 = vpop.xlane.xlu1 %510 }
 0x347   : > { %v512_v51 = vadd.f32 %v511_v50, %v508_v49 }
 0x349   : > { %514 = vst.msk [vmem:[#allocation3] sm:$0xff] %vm404_vm0, %v512_v51 }
 0x34a   : > { %v593_v55 = vpop.permute.xlu1 %592 }
 0x34b   : > { %v595_v56 = vmul.f32 %v593_v55, %v589_v54 }
 0x350   : > { %v601_v52 = vld [vmem:[#allocation3] sm:$0xff] }
 0x351   : > { %1170 = vrcp.f32 %v601_v52 }
 0x35b   : > { %v1171_v53 = vpop.eup %1170 }
 0x35c   : > { %606 = vperm.xlu1 %1165, %v1171_v53  }
 0x38b   : > { %v585_v57 = vpop.f32.mrb[2].mxu0 }
 0x38c   : > { %v596_v58 = vadd.f32 %v595_v56, %v585_v57  ;;  %v955_v59 = vpop.f32.mrb[3].mxu0 }
 0x38e   : > { %597 = vst [vmem:[#allocation4] sm:$0xff] %v596_v58 }
 0x3db   : > { %v607_v60 = vpop.permute.xlu1 %606 }
 0x3dc   : > { %v609_v61 = vmul.f32 %v607_v60, %v596_v58 }
 0x3de   : > { %989 = vmatmul.mubr.f32.vlgmr.msra.gmra.mrb[0].mxu1 %v609_v61 }
 0x4ae   : > { %703 = sbr.rel (!%p699_p4) target bundleno = 1215 (0x4bf), region = 72 }
 0x4b1   : > { %v693_v63 = vpop.f32.mrb[0].mxu1 }
 0x4b2   : > { %v697_v0 = vadd.f32 %v693_v63, %v610_v62  ;;  %v990_v1 = vpop.f32.mrb[1].mxu1 }
 0x4b4   : > { %698 = vst [vmem:[#allocation5] sm:$0xff] %v697_v0 }
 0x4bb   : > { %v704_v2 = vld [vmem:[#allocation5] sm:$0xff] }
 0x4bc   : > { %v712_v4 = vadd.f32 %v917_v3, %v704_v2 }
 0x4be   : > { %713 = vst [vmem:[%s399_s10] sm:$0xff] %v712_v4 }
 0x4bf PF: > { %s2008_s5 = sld [smem:[#allocation24_spill]]  ;;  %s2010_s4 = sld [smem:[#allocation32_spill]] }
 0x4c0   : > { %s2011_s16 = sld [smem:[#allocation36_spill]]  ;;  %s729_s30 = sshll.u32 %s399_s10, 4  ;;  %s730_s30 = int_to_ptr.vmem [resolvable:$true] %s729_s30 }
 0x4c1   : > { %s715_s18 = scalar_lea.sflag [#allocation9], %s397_s6  ;;  %s1292_s1 = scalar_lea.vmem %s730_s30, 128 }
 0x4c2   : > { %p1293_p6 = scmp.ne.s32.totalorder %s730_s30, %s1292_s1  ;;  %s1460_s28 = smov [#allocation15]  }
 0x4c3   : > { %s1296_s27 = sshll.u32 %s1460_s28, 4  ;;  %s1297_s27 = int_to_ptr.vmem [resolvable:$false] %s1296_s27 }
 0x4c4   : > { %s1298_s12 = scalar_lea.vmem %s1297_s27, 256  ;;  %p1299_p12 = scmp.lt.s32.totalorder %s730_s30, %s1297_s27 }
 0x4c5   : > { %s919_s11 = sshll.u32 %s2008_s5, 7  ;;  %p2012_p11 = scmp.ne.s32.totalorder %s2010_s4, 0 }
 0x4c6   : > { %s1868_s21 = scalar_lea.hbm %s2011_s16, %s919_s11  ;;  %p1300_p10 = scmp.lt.s32.totalorder %s1298_s12, %s1292_s1 }
 0x4c7   : > { %p1294_p3 = pnand %p1293_p6, %p2012_p11 }
 0x4c8   : > { %p1301_p5 = por %p1300_p10, %p1299_p12 }
 0x4c9   : > { %p1295_p2 = pneg %p1294_p3 }
 0x4cb   : > { %p1302_p9 = pnand %p1301_p5, %p1295_p2 }
 0x4cd   : > { %1305 = shalt.err (!%p1302_p9)
}
 0x4ce   : > { %s1306_s7 = scalar_lea.hbm %s1868_s21, 128  ;;  %s1310_s14 = scalar_lea.hbm %s2011_s16, 256 }
 0x4cf   : > { %p1307_p8 = scmp.ne.s32.totalorder %s1868_s21, %s1306_s7  ;;  %p1311_p1 = scmp.lt.u32.totalorder %s1868_s21, %s2011_s16 }
 0x4d0   : > { %p1312_p13 = scmp.lt.u32.totalorder %s1310_s14, %s1306_s7  ;;  %p1314_p6 = scmp.lt.u32.totalorder %s1306_s7, %s1868_s21 }
 0x4d1   : > { %p1308_p0 = pnand %p1307_p8, %p2012_p11 }
 0x4d2   : > { %p1313_p4 = por %p1312_p13, %p1311_p1 }
 0x4d3   : > { %p1309_p7 = pneg %p1308_p0 }
 0x4d4   : > { %p1315_p3 = por %p1314_p6, %p1313_p4 }
 0x4d6   : > { %p1316_p2 = pnand %p1315_p3, %p1309_p7 }
 0x4d8   : > { %1319 = shalt.err (!%p1316_p2)
}
 0x4d9   : > { %1023 = dma.vmem_to_hbm [thread:$0]  (%p2012_p11), %s730_s30, 128, %s1868_s21, %s715_s18  }
 0x4da PF: > { %s2013_s9 = sld [smem:[#allocation26_spill]]  ;;  %s2014_s20 = sld [smem:[#allocation20_spill]] }
 0x4db   : > { %s2015_s24 = sld [smem:[#allocation33_spill]] }
 0x4e0   : > { %p1043_p12 = scmp.ge.s32.totalorder %s2013_s9, 2  ;;  %s741_s5 = sand.u32 1, %s2014_s20  }
 0x4e1   : > { %p2016_p10 = scmp.ne.s32.totalorder %s2015_s24, 0  ;;  %s742_s19 = scalar_lea.sflag [#allocation9], %s741_s5 }
 0x4e3   : > { %p1039_p5 = pnand %p1043_p12, %p2016_p10 }
 0x4e5   : > { %1389 = dma.done.wait (!%p1039_p5), %s742_s19, 128  }
 0x4e6   : > { %1391 = vsyncadd (!%p1039_p5), %s742_s19, 4294967168  ;;  %s27_s6 = sadd.s32 1, %s2013_s9   ;;  %s2018_s18 = sld [smem:[#allocation21_spill]] }
 0x4e7   : > { %p1896_p9 = scmp.ge.s32.totalorder %s27_s6, 10   ;;  %s2019_s19 = sld [smem:[#allocation22_spill]] }
 0x4e8   : > { %s2020_s20 = sld [smem:[#allocation31_spill]]  ;;  %s2021_s4 = sld [smem:[#allocation29_spill]] }
 0x4e9   : > { %s2022_s15 = sld [smem:[#allocation30_spill]]  ;;  %s2023_s28 = sld [smem:[#allocation25_spill]] }
 0x4ea   : > { %s2024_s8 = sld [smem:[#allocation27_spill]]  ;;  %s2025_s30 = sld [smem:[#allocation28_spill]] }
 0x4eb   : > { %s2026_s21 = smov %s1410_s22  ;;  %s2027_s22 = smov %s1414_s23 }
 0x4ec   : > { %s2029_s24 = smov %s1422_s25  ;;  %s2030_s25 = smov %s1426_s26 }
 0x4ed   : > { %s2032_s27 = smov %s1438_s29  ;;  %26 = sbr.rel (!%p1896_p9) target bundleno = 18 (0x12), region = 138 }
 0x4ee   : > { %s2028_s23 = smov %s2021_s4 }
 0x4ef   : > { %s2031_s26 = smov %s2022_s15 }
 0x4f0   : > { %s2033_s29 = smov %s2024_s8 }
 0x4f4   :  { %747 = vsyncpa [#allocation8], 1 }
 0x4f5   :  { %749 = vsyncpa [#allocation8 + $0x1], 1 }
 0x4f6   :  { %750 = vsyncpa [#allocation11], 1 }
 0x4f7   :  { %752 = vsyncpa [#allocation11 + $0x1], 1 }
 0x4f8   :  { %753 = vsyncpa [#allocation14], 1 }
 0x4f9   :  { %755 = vsyncpa [#allocation14 + $0x1], 1 }
 0x4fa   :  { %756 = vsyncpa [#allocation9], 1 }
 0x4fb   :  { %758 = vsyncpa [#allocation9 + $0x1], 1 }

</bundles_post_ra>
